<compile_context>
chip_gen: v6e
topology: v6e:2x2x1
jax: 0.10.0
libtpu: 0.0.40
codegen_flags: <defaults>
</compile_context>

<pallas_src>
import jax
import jax.numpy as jnp
from jax import lax
from jax.experimental import pallas as pl
from jax.experimental.pallas import tpu as pltpu


def _cond_linear_kernel(x_ref, w_ref, b_ref, y_ref, e_ref, o_ref, acc_ref):
    """Computes one (tm, tn) output tile; grid axis 2 (k) accumulates over num_in."""
    k = pl.program_id(2)

    @pl.when(k == 0)
    def _init():
        # Seed the accumulator with the bias — saves the separate add at finalize.
        acc_ref[...] = jnp.broadcast_to(b_ref[...], acc_ref.shape).astype(jnp.float32)

    # x_tile (tm, tk) contracted with w_tile (tn, tk) along the feature axis:
    # this is x @ W.T on the MXU with no wrapper-side transpose of W.
    acc_ref[...] += lax.dot_general(
        x_ref[...], w_ref[...],
        dimension_numbers=(((1,), (1,)), ((), ())),
        preferred_element_type=jnp.float32)

    @pl.when(k == pl.num_programs(2) - 1)
    def _finalize():
        # Fused embedding gather: gamma = one_hot(y_tile) @ embed_tile (MXU matmul).
        n_steps = e_ref.shape[0]
        y_ids = y_ref[...]                                              # (tm, 1) int32
        steps = lax.broadcasted_iota(jnp.int32, (y_ids.shape[0], n_steps), 1)
        onehot = (y_ids == steps).astype(jnp.float32)                   # (tm, n_steps)
        gamma = jnp.dot(onehot, e_ref[...],
                        preferred_element_type=jnp.float32)             # (tm, tn)
        o_ref[...] = gamma * acc_ref[...]                                # cond scale


def _round_up(a, b):
    return (a + b - 1) // b * b


def _pick_tile(dim, cap, align):
    """Largest tile (multiple of `align`, <= cap) minimizing total padding of `dim`."""
    dim_a = _round_up(dim, align)
    cap = max(align, (cap // align) * align)
    if dim_a <= cap:
        return dim_a
    best_t, best_pad = align, None
    for t in range(cap, align - 1, -align):
        padded = _round_up(dim_a, t)
        if best_pad is None or padded < best_pad:
            best_t, best_pad = t, padded
    return best_t


def conditional_linear(x, weight, bias, embed_weight, y,
                       *, tm_max=256, tn_max=256, tk_max=512):
    """Pallas implementation of ConditionalLinear.forward.

    x:            (B, num_in)        (cast to f32, as in the torch code)
    weight:       (num_out, num_in)  -- PyTorch nn.Linear layout (NOT pre-transposed)
    bias:         (num_out,)
    embed_weight: (n_steps, num_out)
    y:            (B,) int step indices
    returns:      (B, num_out) float32
    """
    x = x.astype(jnp.float32)
    weight = weight.astype(jnp.float32)
    bias = bias.astype(jnp.float32)
    embed_weight = embed_weight.astype(jnp.float32)
    y = y.astype(jnp.int32)

    B, num_in = x.shape
    num_out = weight.shape[0]
    n_steps = embed_weight.shape[0]

    # Lane-dense, (8,128)-aligned tiles; divisor-preferring search avoids needless padding.
    tm = _pick_tile(B, tm_max, 8)
    tn = _pick_tile(num_out, tn_max, 128)
    tk = _pick_tile(num_in, tk_max, 128)
    M = _round_up(B, tm)
    N = _round_up(num_out, tn)
    K = _round_up(num_in, tk)

    # Zero-pad so padded rows/cols contribute nothing; output is sliced back below.
    x_p = jnp.pad(x, ((0, M - B), (0, K - num_in)))
    w_p = jnp.pad(weight, ((0, N - num_out), (0, K - num_in)))
    b_p = jnp.pad(bias, (0, N - num_out)).reshape(1, N)
    e_p = jnp.pad(embed_weight, ((0, 0), (0, N - num_out)))
    y_p = jnp.pad(y, (0, M - B)).reshape(M, 1)

    grid = (M // tm, N // tn, K // tk)

    flops = 2 * M * N * K + 2 * M * n_steps * N
    bytes_accessed = 4 * (M * K + N * K + M * N + N + n_steps * N + M)

    out = pl.pallas_call(
        _cond_linear_kernel,
        out_shape=jax.ShapeDtypeStruct((M, N), jnp.float32),
        grid_spec=pltpu.PrefetchScalarGridSpec(
            num_scalar_prefetch=0,
            grid=grid,
            in_specs=[
                pl.BlockSpec((tm, tk), lambda i, j, k: (i, k)),       # x tile
                pl.BlockSpec((tn, tk), lambda i, j, k: (j, k)),       # W tile (untransposed)
                pl.BlockSpec((1, tn), lambda i, j, k: (0, j)),        # bias slice
                pl.BlockSpec((tm, 1), lambda i, j, k: (i, 0)),        # y indices
                pl.BlockSpec((n_steps, tn), lambda i, j, k: (0, j)),  # embed table slice
            ],
            out_specs=pl.BlockSpec((tm, tn), lambda i, j, k: (i, j)),
            scratch_shapes=[pltpu.VMEM((tm, tn), jnp.float32)],
        ),
        compiler_params=pltpu.CompilerParams(
            dimension_semantics=("parallel", "parallel", "arbitrary")),
        cost_estimate=pl.CostEstimate(
            flops=flops, transcendentals=0, bytes_accessed=bytes_accessed),
    )(x_p, w_p, b_p, y_p, e_p)

    return out[:B, :num_out]


if __name__ == "__main__":
    key = jax.random.PRNGKey(0)

    def run_case(batch, num_in, num_out, n_steps, case_key):
        kx, ky, kw, kb, ke = jax.random.split(case_key, 5)
        bound = 1.0 / (num_in ** 0.5)
        # Deterministic params mirroring nn.Linear / nn.Embedding.uniform_():
        weight = jax.random.uniform(kw, (num_out, num_in), jnp.float32,
                                    minval=-bound, maxval=bound)
        bias = jax.random.uniform(kb, (num_out,), jnp.float32,
                                  minval=-bound, maxval=bound)
        embed_weight = jax.random.uniform(ke, (n_steps, num_out), jnp.float32)
        x = jax.random.normal(kx, (batch, num_in), jnp.float32)
        y = jax.random.randint(ky, (batch,), 0, n_steps, dtype=jnp.int32)

        out = jax.block_until_ready(
            conditional_linear(x, weight, bias, embed_weight, y))

        # Pure-JAX reference of the same semantics.
        ref = embed_weight[y] * (x @ weight.T + bias)
        assert out.shape == (batch, num_out)
        assert jnp.allclose(out, ref, atol=1e-4, rtol=1e-4), \
            float(jnp.max(jnp.abs(out - ref)))

    k1, k2 = jax.random.split(key)
    run_case(8, 32, 32, 16, k1)      # module-scale shapes (as in the torch demo)
    run_case(48, 640, 384, 40, k2)   # exercises k-accumulation + multi-tile grid, no pad waste
    print("KERNEL_OK")
</pallas_src>

<mosaic_0001>
module attributes {stable_mosaic.version = 11 : i64} {
  func.func @_cond_linear_kernel(%arg0: i32, %arg1: i32, %arg2: i32, %arg3: memref<8x128xf32, #tpu.memory_space<vmem>>, %arg4: memref<128x128xf32, #tpu.memory_space<vmem>>, %arg5: memref<1x128xf32, #tpu.memory_space<vmem>>, %arg6: memref<8x1xi32, #tpu.memory_space<vmem>>, %arg7: memref<16x128xf32, #tpu.memory_space<vmem>>, %arg8: memref<8x128xf32, #tpu.memory_space<vmem>>, %arg9: memref<8x128xf32, #tpu.memory_space<vmem>>) attributes {dimension_semantics = [#tpu.dimension_semantics<parallel>, #tpu.dimension_semantics<parallel>, #tpu.dimension_semantics<arbitrary>], iteration_bounds = array<i64: 1, 1, 1>, scalar_prefetch = 0 : i64, scratch_operands = 1 : i64, tpu.core_type = #tpu.core_type<tc>, window_params = [{transform_indices = @transform_0, window_bounds = array<i64: 8, 128>}, {transform_indices = @transform_1, window_bounds = array<i64: 128, 128>}, {transform_indices = @transform_2, window_bounds = array<i64: 1, 128>}, {transform_indices = @transform_3, window_bounds = array<i64: 8, 1>}, {transform_indices = @transform_4, window_bounds = array<i64: 16, 128>}, {transform_indices = @transform_5, window_bounds = array<i64: 8, 128>}]} {
    %c0_i32 = arith.constant 0 : i32
    %0 = arith.cmpi eq, %arg2, %c0_i32 : i32
    %1 = arith.extui %0 : i1 to i32
    %c0_i32_0 = arith.constant 0 : i32
    %2 = arith.cmpi ne, %1, %c0_i32_0 : i32
    scf.if %2 {
      %c0_10 = arith.constant 0 : index
      %c0_11 = arith.constant 0 : index
      %12 = vector.load %arg5[%c0_10, %c0_11] : memref<1x128xf32, #tpu.memory_space<vmem>>, vector<1x128xf32>
      %13 = vector.shape_cast %12 : vector<1x128xf32> to vector<1x128xf32>
      %14 = vector.broadcast %13 : vector<1x128xf32> to vector<8x128xf32>
      %c0_12 = arith.constant 0 : index
      %c0_13 = arith.constant 0 : index
      %15 = vector.load %arg9[%c0_12, %c0_13] : memref<8x128xf32, #tpu.memory_space<vmem>>, vector<8x128xf32>
      tpu.vector_store %arg9[%c0_12, %c0_13], %14 {strides = array<i32>} : memref<8x128xf32, #tpu.memory_space<vmem>>, vector<8x128xf32>,
    } else {
    }
    %c0 = arith.constant 0 : index
    %c0_1 = arith.constant 0 : index
    %3 = vector.load %arg9[%c0, %c0_1] : memref<8x128xf32, #tpu.memory_space<vmem>>, vector<8x128xf32>
    %c0_2 = arith.constant 0 : index
    %c0_3 = arith.constant 0 : index
    %4 = vector.load %arg3[%c0_2, %c0_3] : memref<8x128xf32, #tpu.memory_space<vmem>>, vector<8x128xf32>
    %c0_4 = arith.constant 0 : index
    %c0_5 = arith.constant 0 : index
    %5 = vector.load %arg4[%c0_4, %c0_5] : memref<128x128xf32, #tpu.memory_space<vmem>>, vector<128x128xf32>
    %cst = arith.constant dense<0.000000e+00> : vector<8x128xf32>
    %6 = tpu.matmul %4, %5, %cst {dimension_numbers = #tpu.dot_dimension_numbers<[1], [1], [0], [0], [0, 0, 1, 0], [], []>} : vector<8x128xf32>, vector<128x128xf32>, vector<8x128xf32> -> vector<8x128xf32>
    %7 = arith.addf %3, %6 : vector<8x128xf32>
    %c0_6 = arith.constant 0 : index
    %c0_7 = arith.constant 0 : index
    %8 = vector.load %arg9[%c0_6, %c0_7] : memref<8x128xf32, #tpu.memory_space<vmem>>, vector<8x128xf32>
    tpu.vector_store %arg9[%c0_6, %c0_7], %7 {strides = array<i32>} : memref<8x128xf32, #tpu.memory_space<vmem>>, vector<8x128xf32>,
    %c0_i32_8 = arith.constant 0 : i32
    %9 = arith.cmpi eq, %arg2, %c0_i32_8 : i32
    %10 = arith.extui %9 : i1 to i32
    %c0_i32_9 = arith.constant 0 : i32
    %11 = arith.cmpi ne, %10, %c0_i32_9 : i32
    scf.if %11 {
      %c0_10 = arith.constant 0 : index
      %c0_11 = arith.constant 0 : index
      %12 = vector.load %arg6[%c0_10, %c0_11] : memref<8x1xi32, #tpu.memory_space<vmem>>, vector<8x1xi32>
      %13 = tpu.iota {dimensions = array<i32: 1>} : vector<8x16xi32>
      %14 = vector.broadcast %12 : vector<8x1xi32> to vector<8x16xi32>
      %15 = arith.cmpi eq, %14, %13 : vector<8x16xi32>
      %16 = arith.extui %15 : vector<8x16xi1> to vector<8x16xi32>
      %17 = arith.sitofp %16 : vector<8x16xi32> to vector<8x16xf32>
      %c0_12 = arith.constant 0 : index
      %c0_13 = arith.constant 0 : index
      %18 = vector.load %arg7[%c0_12, %c0_13] : memref<16x128xf32, #tpu.memory_space<vmem>>, vector<16x128xf32>
      %cst_14 = arith.constant dense<0.000000e+00> : vector<8x128xf32>
      %19 = tpu.matmul %17, %18, %cst_14 {dimension_numbers = #tpu.dot_dimension_numbers<[1], [0], [0], [1], [0, 0, 1, 1], [], []>} : vector<8x16xf32>, vector<16x128xf32>, vector<8x128xf32> -> vector<8x128xf32>
      %c0_15 = arith.constant 0 : index
      %c0_16 = arith.constant 0 : index
      %20 = vector.load %arg9[%c0_15, %c0_16] : memref<8x128xf32, #tpu.memory_space<vmem>>, vector<8x128xf32>
      %21 = arith.mulf %19, %20 : vector<8x128xf32>
      %c0_17 = arith.constant 0 : index
      %c0_18 = arith.constant 0 : index
      %22 = vector.load %arg8[%c0_17, %c0_18] : memref<8x128xf32, #tpu.memory_space<vmem>>, vector<8x128xf32>
      tpu.vector_store %arg8[%c0_17, %c0_18], %21 {strides = array<i32>} : memref<8x128xf32, #tpu.memory_space<vmem>>, vector<8x128xf32>,
    } else {
    }
    return
  }
  func.func @transform_0(%arg0: i32, %arg1: i32, %arg2: i32) -> (i32, i32) {
    %c0_i32 = arith.constant 0 : i32
    return %arg0, %arg2 : i32, i32
  }
  func.func @transform_1(%arg0: i32, %arg1: i32, %arg2: i32) -> (i32, i32) {
    %c0_i32 = arith.constant 0 : i32
    return %arg1, %arg2 : i32, i32
  }
  func.func @transform_2(%arg0: i32, %arg1: i32, %arg2: i32) -> (i32, i32) {
    %c0_i32 = arith.constant 0 : i32
    %c0_i32_0 = arith.constant 0 : i32
    return %c0_i32, %arg1 : i32, i32
  }
  func.func @transform_3(%arg0: i32, %arg1: i32, %arg2: i32) -> (i32, i32) {
    %c0_i32 = arith.constant 0 : i32
    %c0_i32_0 = arith.constant 0 : i32
    return %arg0, %c0_i32 : i32, i32
  }
  func.func @transform_4(%arg0: i32, %arg1: i32, %arg2: i32) -> (i32, i32) {
    %c0_i32 = arith.constant 0 : i32
    %c0_i32_0 = arith.constant 0 : i32
    return %c0_i32, %arg1 : i32, i32
  }
  func.func @transform_5(%arg0: i32, %arg1: i32, %arg2: i32) -> (i32, i32) {
    %c0_i32 = arith.constant 0 : i32
    return %arg0, %arg1 : i32, i32
  }
}

</mosaic_0001>

<bundles_post_ra>
// kernel: tpu_custom_call.1
= control target key start
LH: loop header
LB: loop body
LE: loop exit
PB: predicated region body
PF: predicated region fallthrough
CT: control target
= control target key end

     0   :  { %10 = vsyncpa [#allocation4], 0  ;;  %s509_s0 = inlined_call_operand.hbm [shape: f32[8,128], index: 0, kind: input, shape index: {}]   ;;  %s510_s1 = inlined_call_operand.hbm [shape: f32[128,128], index: 1, kind: input, shape index: {}]   ;;  %s511_s2 = inlined_call_operand.hbm [shape: f32[1,128], index: 2, kind: input, shape index: {}]   ;;  %s512_s3 = inlined_call_operand.vmem [shape: s32[8,1], index: 3, kind: input, shape index: {}]   ;;  %s513_s4 = inlined_call_operand.vmem [shape: f32[16,128], index: 4, kind: input, shape index: {}]   ;;  %s514_s5 = inlined_call_operand.hbm [shape: f32[8,128], index: 5, kind: output, shape index: {}]  }
   0x1   :  { %11 = vsyncpa [#allocation7], 0 }
   0x2   :  { %12 = vsyncpa [#allocation5], 0  ;;  %s428_s18 = smov [#allocation6]  }
   0x3   :  { %s28_s19 = sshll.u32 %s428_s18, 4  ;;  %s29_s19 = int_to_ptr.vmem [resolvable:$true] %s28_s19 }
   0x4   :  { %s350_s20 = scalar_lea.vmem %s29_s19, 2048  ;;  %p355_p1 = scmp.lt.s32.totalorder %s29_s19, %s29_s19 }
   0x5   :  { %p351_p0 = scmp.ne.s32.totalorder %s29_s19, %s350_s20  ;;  %p356_p2 = scmp.lt.s32.totalorder %s350_s20, %s350_s20 }
   0x7   :  { %p357_p3 = por %p356_p2, %p355_p1 }
   0x9   :  { %p358_p4 = pnand %p357_p3, %p351_p0 }
   0xb   :  { %361 = shalt.err (!%p358_p4)
}
   0xc   :  { %s429_s21 = smov 128   ;;  %s430_s22 = smov 8  }
   0xd   :  { %34 = dma.hbm_to_vmem [thread:$0]  %s510_s1, 2048, %s29_s19, [#allocation7], %s429_s21, %s429_s21, %s430_s22  }
   0xe   :  { %s431_s25 = smov [#allocation3]   ;;  %s432_s27 = smov [#allocation8]  }
   0xf   :  { %s19_s26 = sshll.u32 %s431_s25, 4  ;;  %s41_s28 = sshll.u32 %s432_s27, 4  ;;  %s20_s26 = int_to_ptr.vmem [resolvable:$true] %s19_s26  ;;  %s42_s28 = int_to_ptr.vmem [resolvable:$true] %s41_s28 }
  0x10   :  { %s370_s29 = scalar_lea.vmem %s20_s26, 128  ;;  %p375_p6 = scmp.lt.s32.totalorder %s20_s26, %s20_s26 }
  0x11   :  { %p371_p5 = scmp.ne.s32.totalorder %s20_s26, %s370_s29  ;;  %p376_p7 = scmp.lt.s32.totalorder %s370_s29, %s370_s29 }
  0x13   :  { %p377_p8 = por %p376_p7, %p375_p6 }
  0x15   :  { %p378_p9 = pnand %p377_p8, %p371_p5 }
  0x17   :  { %381 = shalt.err (!%p378_p9)
}
  0x18   :  { %22 = dma.hbm_to_vmem [thread:$0]  %s509_s0, 128, %s20_s26, [#allocation4]  }
  0x19   :  { %s390_s7 = scalar_lea.vmem %s42_s28, 16  ;;  %s394_s1 = scalar_lea.vmem %s42_s28, 32 }
  0x1a   :  { %p391_p10 = scmp.ne.s32.totalorder %s42_s28, %s390_s7  ;;  %p395_p11 = scmp.lt.s32.totalorder %s42_s28, %s42_s28 }
  0x1b   :  { %p396_p12 = scmp.lt.s32.totalorder %s394_s1, %s390_s7 }
  0x1d   :  { %p397_p13 = por %p396_p12, %p395_p11 }
  0x1f   :  { %p398_p0 = pnand %p397_p13, %p391_p10 }
  0x21   :  { %401 = shalt.err (!%p398_p0)
}
  0x22   :  { %44 = dma.hbm_to_vmem [thread:$0]  %s511_s2, 16, %s42_s28, [#allocation7]  }
  0x23   :  { %422 = dma.done.wait [#allocation4], 128  }
  0x24   :  { %423 = vsyncadd [#allocation4], 4294967168 }
  0x25   :  { %424 = dma.done.wait [#allocation7], 2064  }
  0x26   :  { %425 = vsyncadd [#allocation7], 4294965232  ;;  %v433_v0 = vmov 0   ;;  %v434_v1 = vmov 0.0   ;;  %vm435_vm0 = vmmov 0   ;;  %v163_v2 = vld [vmem:[%s512_s3] sm:$0xff]  ;;  %v164_v22 = vlaneseq }
  0x27   :  { %341 = vset.pattern.permute.xlu0 %v433_v0  ;;  %290 = vmatprep.subr.mxu0 %v434_v1  ;;  %v87_v3 = vld [vmem:[#allocation6 + $0x78] sm:$0xff]  ;;  %v86_v4 = vld [vmem:[#allocation6 + $0x70] sm:$0xff]  ;;  %v85_v5 = vld [vmem:[#allocation6 + $0x68] sm:$0xff]  ;;  %vm174_vm1 = vcmask 130048   ;;  %s436_s3 = smov [#allocation9]  }
  0x28   :  { %322 = vmatprep.mubr.msk.f32.mxu0 %vm435_vm0, %v434_v1  ;;  %325 = vmatprep.subr.mxu1 %v434_v1  ;;  %v173_v6 = vld [vmem:[%s513_s4 + $0x8] sm:$0xff]  ;;  %v172_v7 = vld [vmem:[%s513_s4] sm:$0xff]  ;;  %v82_v10 = vld [vmem:[#allocation6 + $0x50] sm:$0xff]  ;;  %v165_v23 = vand.u32 127, %v164_v22  ;;  %s257_s4 = sshll.u32 %s436_s3, 4  ;;  %s258_s4 = int_to_ptr.vmem [resolvable:$true] %s257_s4 }
  0x29   :  { %329 = vmatprep.mubr.msk.f32.mxu1 %vm435_vm0, %v434_v1  ;;  %167 = vperm.xlu0 %341, %v163_v2   ;;  %v84_v8 = vld [vmem:[#allocation6 + $0x60] sm:$0xff]  ;;  %v83_v9 = vld [vmem:[#allocation6 + $0x58] sm:$0xff]  ;;  %v81_v11 = vld [vmem:[#allocation6 + $0x48] sm:$0xff]  ;;  %s402_s14 = scalar_lea.vmem %s258_s4, 128  ;;  %p407_p2 = scmp.lt.s32.totalorder %s258_s4, %s258_s4 }
  0x2a   :  { %291 = vmatpush3.xpose.msra.mxu0 %v87_v3  ;;  %326 = vmatpush3.msra.mxu1 %v173_v6  ;;  %v80_v12 = vld [vmem:[#allocation6 + $0x40] sm:$0xff]  ;;  %v79_v13 = vld [vmem:[#allocation6 + $0x38] sm:$0xff]  ;;  %v78_v14 = vld [vmem:[#allocation6 + $0x30] sm:$0xff]  ;;  %p403_p1 = scmp.ne.s32.totalorder %s258_s4, %s402_s14  ;;  %p408_p3 = scmp.lt.s32.totalorder %s402_s14, %s402_s14 }
  0x2b   :  { %292 = vmatprep.subr.mxu0 %v434_v1  ;;  %327 = vmatprep.subr.mxu1 %v434_v1  ;;  %v77_v15 = vld [vmem:[#allocation6 + $0x28] sm:$0xff]  ;;  %v76_v16 = vld [vmem:[#allocation6 + $0x20] sm:$0xff]  ;;  %v75_v17 = vld [vmem:[#allocation6 + $0x18] sm:$0xff] }
  0x2c   :  { %328 = vmatpush3.msra.mxu1 %v172_v7  ;;  %v74_v18 = vld [vmem:[#allocation6 + $0x10] sm:$0xff]  ;;  %v73_v19 = vld [vmem:[#allocation6 + $0x8] sm:$0xff]  ;;  %v72_v20 = vld [vmem:[#allocation6] sm:$0xff]  ;;  %p409_p4 = por %p408_p3, %p407_p2 }
  0x2d   :  { %v71_v21 = vld [vmem:[#allocation3] sm:$0xff]  ;;  %v267_v28 = vld [vmem:[#allocation8] ss:$0 sm:$0xff] }
  0x2e   :  { %293 = vmatpush3.xpose.msra.mxu0 %v86_v4  ;;  %p410_p5 = pnand %p409_p4, %p403_p1 }
  0x2f   :  { %294 = vmatprep.subr.mxu0 %v434_v1 }
  0x32   :  { %295 = vmatpush3.xpose.msra.mxu0 %v85_v5 }
  0x33   :  { %296 = vmatprep.subr.mxu0 %v434_v1 }
  0x36   :  { %297 = vmatpush3.xpose.msra.mxu0 %v84_v8 }
  0x37   :  { %298 = vmatprep.subr.mxu0 %v434_v1 }
  0x3a   :  { %299 = vmatpush3.xpose.msra.mxu0 %v83_v9 }
  0x3b   :  { %300 = vmatprep.subr.mxu0 %v434_v1 }
  0x3e   :  { %301 = vmatpush3.xpose.msra.mxu0 %v82_v10 }
  0x3f   :  { %302 = vmatprep.subr.mxu0 %v434_v1 }
  0x42   :  { %303 = vmatpush3.xpose.msra.mxu0 %v81_v11 }
  0x43   :  { %304 = vmatprep.subr.mxu0 %v434_v1 }
  0x46   :  { %305 = vmatpush3.xpose.msra.mxu0 %v80_v12 }
  0x47   :  { %306 = vmatprep.subr.mxu0 %v434_v1 }
  0x4a   :  { %307 = vmatpush3.xpose.msra.mxu0 %v79_v13 }
  0x4b   :  { %308 = vmatprep.subr.mxu0 %v434_v1 }
  0x4e   :  { %309 = vmatpush3.xpose.msra.mxu0 %v78_v14 }
  0x4f   :  { %310 = vmatprep.subr.mxu0 %v434_v1 }
  0x52   :  { %311 = vmatpush3.xpose.msra.mxu0 %v77_v15 }
  0x53   :  { %312 = vmatprep.subr.mxu0 %v434_v1 }
  0x56   :  { %313 = vmatpush3.xpose.msra.mxu0 %v76_v16 }
  0x57   :  { %314 = vmatprep.subr.mxu0 %v434_v1 }
  0x5a   :  { %315 = vmatpush3.xpose.msra.mxu0 %v75_v17 }
  0x5b   :  { %316 = vmatprep.subr.mxu0 %v434_v1 }
  0x5e   :  { %317 = vmatpush3.xpose.msra.mxu0 %v74_v18 }
  0x5f   :  { %318 = vmatprep.subr.mxu0 %v434_v1 }
  0x62   :  { %319 = vmatpush3.xpose.msra.mxu0 %v73_v19 }
  0x63   :  { %320 = vmatprep.subr.mxu0 %v434_v1 }
  0x66   :  { %321 = vmatpush3.xpose.msra.mxu0 %v72_v20 }
  0x69   :  { %323 = vmatmul.mubr.f32.vlgmr.msra.gmra.mxu0 %v71_v21 }
  0xa4   :  { %v168_v24 = vpop.permute.xlu0 %167 }
  0xa5   :  { %vm169_vm2 = vcmp.eq.s32.totalorder %v168_v24, %v165_v23 }
  0xa6   :  { %v268_v25 = vsel %vm169_vm2, 1.0, %v434_v1 }
  0xa7   :  { %330 = vmatmul.mubr.msk.f32.vlgmr.msra.gmra.mxu1 %vm174_vm1, %v268_v25 }
 0x129   :  { %v154_v26 = vpop.f32.mrf.mxu0 }
 0x12a   :  { %v158_v29 = vadd.f32 %v267_v28, %v154_v26 }
 0x12b   :  { %v324_v27 = vpop.f32.mrf.mxu0 }
 0x167   :  { %v244_v30 = vpop.f32.mrf.mxu1 }
 0x168   :  { %v249_v31 = vmul.f32 %v244_v30, %v158_v29 }
 0x169   :  { %v331_v32 = vpop.f32.mrf.mxu1 }
 0x16a   :  { %250 = vst [vmem:[#allocation9] sm:$0xff] %v249_v31 }
 0x16b   :  { %413 = shalt.err (!%p410_p5)
}
 0x16c   :  { %260 = dma.vmem_to_hbm [thread:$0]  %s258_s4, 128, %s514_s5, [#allocation5]  }
 0x16d   :  { %426 = dma.done.wait [#allocation5], 128  }
 0x16e   :  { %427 = vsyncadd [#allocation5], 4294967168 }
 0x16f   :  { %264 = vsyncpa [#allocation4], 1 }
 0x170   :  { %265 = vsyncpa [#allocation7], 1 }
 0x171   :  { %266 = vsyncpa [#allocation5], 1 }

</bundles_post_ra>
